<compile_context>
chip_gen: v6e
topology: v6e:2x2x1
jax: 0.10.0
libtpu: 0.0.40
codegen_flags: <defaults>
</compile_context>

<pallas_src>
import jax
import jax.numpy as jnp
from jax.experimental import pallas as pl
from jax.experimental.pallas import tpu as pltpu


def _cdiv(a: int, b: int) -> int:
    return (a + b - 1) // b


def _round_up(x: int, m: int) -> int:
    return ((x + m - 1) // m) * m


def _vmem_capacity_bytes() -> int:
    try:
        return int(pltpu.get_tpu_info().vmem_capacity_bytes)
    except Exception:
        return 64 << 20  # safe default: v7x physical VMEM per TensorCore


def _balanced_tile(extent: int, cap: int, align: int) -> int:
    """Tile size <= ~cap, aligned, with roughly equal-sized tiles."""
    if extent < align:
        return extent  # block_shape equal to the full array dim is always legal
    n_tiles = _cdiv(extent, cap)
    return _round_up(_cdiv(extent, n_tiles), align)


def _sparse_dynamic_kernel(x_ref, w_ref, b_ref, o_ref):
    # x_ref: (TM, D_in) bf16   w_ref: (D_in, TN) bf16
    # b_ref: (1, TN)    f32    o_ref: (TM, TN)   out dtype
    y = jnp.dot(x_ref[...], w_ref[...], preferred_element_type=jnp.float32)
    y = y + b_ref[...]                       # bias broadcast over rows
    # sigmoid(y) == 0.5 * tanh(0.5 * y) + 0.5  (tanh lives on the EUP slot)
    o_ref[...] = (0.5 * jnp.tanh(0.5 * y) + 0.5).astype(o_ref.dtype)


def sparse_dynamic_layer(x, weight, bias):
    """x: (B, S, D_in), weight: (D_out, D_in), bias: (D_out,) -> (B, S, D_out)."""
    B, S, D_in = x.shape
    D_out = weight.shape[0]
    M = B * S

    out_dtype = x.dtype
    out_item = jnp.dtype(out_dtype).itemsize
    BF = 2  # bf16 bytes per element for the matmul operands

    # ---- Wrapper-side layout prep (reshape + bf16 cast; W transposed once). ----
    x2d = x.reshape(M, D_in).astype(jnp.bfloat16)
    wT = weight.T.astype(jnp.bfloat16)              # (D_in, D_out), fused cast+transpose
    b2d = bias.reshape(1, D_out).astype(jnp.float32)

    # ---- VMEM budget (per-generation) and shape-aware tile selection. ----
    vmem_cap = _vmem_capacity_bytes()
    budget = min(int(vmem_cap * 0.85), vmem_cap - (12 << 20))

    def step_bytes(tm, tn):
        # Every pipelined operand/output is double-buffered by default.
        return 2 * (tm * D_in * BF + D_in * tn * BF + tn * 4 + tm * tn * out_item)

    tm_cap, tn_cap = 1024, 2048
    tm = _balanced_tile(M, tm_cap, 16)        # rows -> sublanes (bf16 packs 16)
    tn = _balanced_tile(D_out, tn_cap, 128)   # cols -> lanes
    while step_bytes(tm, tn) > budget:
        if tm <= 16 and tn <= 128:
            break  # minimum tiles (always fits for realistic D_in)
        if tm >= tn and tm > 16:
            tm_cap = max(tm // 2, 16)
        elif tn > 128:
            tn_cap = max(tn // 2, 128)
        else:
            tm_cap = max(tm // 2, 16)
        tm = _balanced_tile(M, tm_cap, 16)
        tn = _balanced_tile(D_out, tn_cap, 128)

    grid_m = _cdiv(M, tm)
    grid_n = _cdiv(D_out, tn)

    # v7x has 2 TensorCores per chip: make sure >=2 tiles exist when possible.
    if grid_m * grid_n < 2:
        if M >= 32:
            tm = _round_up(_cdiv(M, 2), 16)
            grid_m = _cdiv(M, tm)
        elif D_out >= 256:
            tn = _round_up(_cdiv(D_out, 2), 128)
            grid_n = _cdiv(D_out, tn)

    # ---- Grid ordering: keep the LARGER operand resident across the inner axis
    # (its block index only depends on the outer axis, so Pallas skips its DMA),
    # and re-stream the smaller one. ----
    x_resident = (M * D_in) >= (D_out * D_in)
    if x_resident:
        grid = (grid_m, grid_n)                       # M outer, N inner
        x_map = lambda i, j: (i, 0)
        w_map = lambda i, j: (0, j)
        b_map = lambda i, j: (0, j)
        o_map = lambda i, j: (i, j)
        bytes_accessed = (M * D_in * BF
                          + grid_m * (D_out * D_in * BF + D_out * 4)
                          + M * D_out * out_item)
    else:
        grid = (grid_n, grid_m)                       # N outer, M inner
        x_map = lambda j, i: (i, 0)
        w_map = lambda j, i: (0, j)
        b_map = lambda j, i: (0, j)
        o_map = lambda j, i: (i, j)
        bytes_accessed = (grid_n * M * D_in * BF
                          + D_out * D_in * BF + D_out * 4
                          + M * D_out * out_item)

    vmem_limit = int(min(max(step_bytes(tm, tn) + (4 << 20), 32 << 20),
                         vmem_cap - (8 << 20)))

    cost = pl.CostEstimate(
        flops=2 * M * D_in * D_out,
        transcendentals=M * D_out,                    # sigmoid/tanh epilogue
        bytes_accessed=int(bytes_accessed),
    )

    out2d = pl.pallas_call(
        _sparse_dynamic_kernel,
        out_shape=jax.ShapeDtypeStruct((M, D_out), out_dtype),
        grid_spec=pltpu.PrefetchScalarGridSpec(
            num_scalar_prefetch=0,
            grid=grid,
            in_specs=[
                pl.BlockSpec((tm, D_in), x_map),      # activations tile (bf16)
                pl.BlockSpec((D_in, tn), w_map),      # weight tile (bf16, pre-T)
                pl.BlockSpec((1, tn), b_map),         # bias tile (f32)
            ],
            out_specs=pl.BlockSpec((tm, tn), o_map),
        ),
        compiler_params=pltpu.CompilerParams(
            dimension_semantics=("parallel", "parallel"),
            vmem_limit_bytes=vmem_limit,
        ),
        cost_estimate=cost,
    )(x2d, wT, b2d)

    return out2d.reshape(B, S, D_out)


def _reference(x, weight, bias):
    y = jnp.einsum("bsi,oi->bso", x, weight) + bias
    return jax.nn.sigmoid(y)


if __name__ == "__main__":
    # Small shapes consistent with the module's (batch, seq, input_dim) contract.
    batch, seq, input_dim, output_dim = 2, 8, 32, 32

    key = jax.random.PRNGKey(0)
    kx, kw, kb = jax.random.split(key, 3)

    x = jax.random.normal(kx, (batch, seq, input_dim), dtype=jnp.float32)

    # Deterministic Linear init (PyTorch-style uniform(-1/sqrt(fan_in), 1/sqrt(fan_in))).
    bound = 1.0 / (input_dim ** 0.5)
    weight = jax.random.uniform(kw, (output_dim, input_dim), jnp.float32, -bound, bound)
    bias = jax.random.uniform(kb, (output_dim,), jnp.float32, -bound, bound)

    out = sparse_dynamic_layer(x, weight, bias)
    out = jax.block_until_ready(out)

    ref = _reference(x, weight, bias)
    assert out.shape == (batch, seq, output_dim)
    # bf16 matmul operands -> compare at a bf16-appropriate tolerance.
    assert jnp.allclose(out, ref, atol=2e-2, rtol=2e-2), "mismatch vs reference"

    print("KERNEL_OK")
</pallas_src>

<mosaic_0001>
module attributes {stable_mosaic.version = 11 : i64} {
  func.func @_sparse_dynamic_kernel(%arg0: i32, %arg1: i32, %arg2: memref<16x32xbf16, #tpu.memory_space<vmem>>, %arg3: memref<32x32xbf16, #tpu.memory_space<vmem>>, %arg4: memref<1x32xf32, #tpu.memory_space<vmem>>, %arg5: memref<16x32xf32, #tpu.memory_space<vmem>>) attributes {dimension_semantics = [#tpu.dimension_semantics<parallel>, #tpu.dimension_semantics<parallel>], iteration_bounds = array<i64: 1, 1>, scalar_prefetch = 0 : i64, scratch_operands = 0 : i64, tpu.core_type = #tpu.core_type<tc>, window_params = [{transform_indices = @transform_0, window_bounds = array<i64: 16, 32>}, {transform_indices = @transform_1, window_bounds = array<i64: 32, 32>}, {transform_indices = @transform_2, window_bounds = array<i64: 1, 32>}, {transform_indices = @transform_3, window_bounds = array<i64: 16, 32>}]} {
    %c0 = arith.constant 0 : index
    %c0_0 = arith.constant 0 : index
    %0 = vector.load %arg2[%c0, %c0_0] : memref<16x32xbf16, #tpu.memory_space<vmem>>, vector<16x32xbf16>
    %c0_1 = arith.constant 0 : index
    %c0_2 = arith.constant 0 : index
    %1 = vector.load %arg3[%c0_1, %c0_2] : memref<32x32xbf16, #tpu.memory_space<vmem>>, vector<32x32xbf16>
    %cst = arith.constant dense<0.000000e+00> : vector<16x32xf32>
    %2 = tpu.matmul %0, %1, %cst {dimension_numbers = #tpu.dot_dimension_numbers<[1], [0], [0], [1], [0, 0, 1, 1], [], []>} : vector<16x32xbf16>, vector<32x32xbf16>, vector<16x32xf32> -> vector<16x32xf32>
    %c0_3 = arith.constant 0 : index
    %c0_4 = arith.constant 0 : index
    %3 = vector.load %arg4[%c0_3, %c0_4] : memref<1x32xf32, #tpu.memory_space<vmem>>, vector<1x32xf32>
    %4 = vector.broadcast %3 : vector<1x32xf32> to vector<16x32xf32>
    %5 = arith.addf %2, %4 : vector<16x32xf32>
    %cst_5 = arith.constant 5.000000e-01 : f32
    %6 = vector.broadcast %cst_5 : f32 to vector<16x32xf32>
    %7 = arith.mulf %6, %5 : vector<16x32xf32>
    %8 = math.tanh %7 : vector<16x32xf32>
    %cst_6 = arith.constant 5.000000e-01 : f32
    %9 = vector.broadcast %cst_6 : f32 to vector<16x32xf32>
    %10 = arith.mulf %9, %8 : vector<16x32xf32>
    %cst_7 = arith.constant 5.000000e-01 : f32
    %11 = vector.broadcast %cst_7 : f32 to vector<16x32xf32>
    %12 = arith.addf %10, %11 : vector<16x32xf32>
    %c0_8 = arith.constant 0 : index
    %c0_9 = arith.constant 0 : index
    %13 = vector.load %arg5[%c0_8, %c0_9] : memref<16x32xf32, #tpu.memory_space<vmem>>, vector<16x32xf32>
    tpu.vector_store %arg5[%c0_8, %c0_9], %12 {strides = array<i32>} : memref<16x32xf32, #tpu.memory_space<vmem>>, vector<16x32xf32>,
    return
  }
  func.func @transform_0(%arg0: i32, %arg1: i32) -> (i32, i32) {
    %c0_i32 = arith.constant 0 : i32
    %c0_i32_0 = arith.constant 0 : i32
    return %arg1, %c0_i32 : i32, i32
  }
  func.func @transform_1(%arg0: i32, %arg1: i32) -> (i32, i32) {
    %c0_i32 = arith.constant 0 : i32
    %c0_i32_0 = arith.constant 0 : i32
    return %c0_i32, %arg0 : i32, i32
  }
  func.func @transform_2(%arg0: i32, %arg1: i32) -> (i32, i32) {
    %c0_i32 = arith.constant 0 : i32
    %c0_i32_0 = arith.constant 0 : i32
    return %c0_i32, %arg0 : i32, i32
  }
  func.func @transform_3(%arg0: i32, %arg1: i32) -> (i32, i32) {
    %c0_i32 = arith.constant 0 : i32
    return %arg1, %arg0 : i32, i32
  }
}

</mosaic_0001>

<bundles_post_ra>
// kernel: tpu_custom_call.1
= control target key start
LH: loop header
LB: loop body
LE: loop exit
PB: predicated region body
PF: predicated region fallthrough
CT: control target
= control target key end

     0   :  { %8 = vsyncpa [#allocation3], 0  ;;  %s289_s0 = inlined_call_operand.hbm [shape: bf16[16,32], index: 0, kind: input, shape index: {}]   ;;  %s290_s1 = inlined_call_operand.hbm [shape: bf16[32,32], index: 1, kind: input, shape index: {}]   ;;  %s291_s2 = inlined_call_operand.vmem [shape: f32[1,32], index: 2, kind: input, shape index: {}]   ;;  %s292_s3 = inlined_call_operand.hbm [shape: f32[16,32], index: 3, kind: output, shape index: {}]  }
   0x1   :  { %9 = vsyncpa [#allocation6], 0 }
   0x2   :  { %10 = vsyncpa [#allocation4], 0  ;;  %s245_s12 = smov [#allocation2]  }
   0x3   :  { %s16_s13 = sshll.u32 %s245_s12, 4  ;;  %s17_s13 = int_to_ptr.vmem [resolvable:$true] %s16_s13 }
   0x4   :  { %s187_s14 = scalar_lea.vmem %s17_s13, 128  ;;  %p192_p1 = scmp.lt.s32.totalorder %s17_s13, %s17_s13 }
   0x5   :  { %p188_p0 = scmp.ne.s32.totalorder %s17_s13, %s187_s14  ;;  %p193_p2 = scmp.lt.s32.totalorder %s187_s14, %s187_s14 }
   0x7   :  { %p194_p3 = por %p193_p2, %p192_p1 }
   0x9   :  { %p195_p4 = pnand %p194_p3, %p188_p0 }
   0xb   :  { %198 = shalt.err (!%p195_p4)
}
   0xc   :  { %s246_s15 = smov 64   ;;  %s247_s16 = smov 4  }
   0xd   :  { %22 = dma.hbm_to_vmem [thread:$0]  %s289_s0, 128, %s17_s13, [#allocation3], %s246_s15, %s246_s15, %s247_s16  }
   0xe   :  { %s248_s19 = smov [#allocation5]  }
   0xf   :  { %s28_s20 = sshll.u32 %s248_s19, 4  ;;  %s29_s20 = int_to_ptr.vmem [resolvable:$true] %s28_s20 }
  0x10   :  { %s207_s21 = scalar_lea.vmem %s29_s20, 256  ;;  %p212_p6 = scmp.lt.s32.totalorder %s29_s20, %s29_s20 }
  0x11   :  { %p208_p5 = scmp.ne.s32.totalorder %s29_s20, %s207_s21  ;;  %p213_p7 = scmp.lt.s32.totalorder %s207_s21, %s207_s21 }
  0x13   :  { %p214_p8 = por %p213_p7, %p212_p6 }
  0x15   :  { %p215_p9 = pnand %p214_p8, %p208_p5 }
  0x17   :  { %218 = shalt.err (!%p215_p9)
}
  0x18   :  { %34 = dma.hbm_to_vmem [thread:$0]  %s290_s1, 256, %s29_s20, [#allocation6], %s246_s15, %s246_s15, %s247_s16  }
  0x19   :  { %239 = dma.done.wait [#allocation3], 128  }
  0x1a   :  { %240 = vsyncadd [#allocation3], 4294967168 }
  0x1b   :  { %241 = dma.done.wait [#allocation6], 256  }
  0x1c   :  { %242 = vsyncadd [#allocation6], 4294967040  ;;  %v249_v0 = vmov 0.0   ;;  %vm250_vm0 = vmmov 0   ;;  %v172_v1 = vld [vmem:[#allocation5 + $0x8] sm:$0xff]   ;;  %v173_v2 = vld [vmem:[#allocation5] sm:$0xff]  }
  0x1d   :  { %155 = vmatprep.subr.bf16.mxu0 %v249_v0  ;;  %159 = vmatprep.mubr.msk.bf16.mxu0 %vm250_vm0, %v249_v0  ;;  %v174_v3 = vld [vmem:[#allocation2] sm:$0xff]   ;;  %vm74_vm1 = vcmask 261120   ;;  %s251_s1 = smov [#allocation7]  }
  0x1e   :  { %156 = vmatpush3.bf16.msra.mxu0 %v172_v1  ;;  %v147_v4 = vld [vmem:[%s291_s2] ss:$0 sm:$0xff]  ;;  %s134_s25 = sshll.u32 %s251_s1, 4  ;;  %s135_s25 = int_to_ptr.vmem [resolvable:$true] %s134_s25 }
  0x1f   :  { %157 = vmatprep.subr.bf16.mxu0 %v249_v0  ;;  %s219_s2 = scalar_lea.vmem %s135_s25, 256  ;;  %p224_p11 = scmp.lt.s32.totalorder %s135_s25, %s135_s25 }
  0x20   :  { %p220_p10 = scmp.ne.s32.totalorder %s135_s25, %s219_s2  ;;  %p225_p12 = scmp.lt.s32.totalorder %s219_s2, %s219_s2 }
  0x22   :  { %158 = vmatpush3.bf16.msra.mxu0 %v173_v2  ;;  %p226_p13 = por %p225_p12, %p224_p11 }
  0x24   :  { %p227_p0 = pnand %p226_p13, %p220_p10 }
  0x25   :  { %160 = vmatmul.mubr.msk.bf16.vlgmr.msra.gmra.mxu0 %vm74_vm1, %v174_v3 }
  0xe5   :  { %v112_v5 = vpop.f32.mrf.mxu0 }
  0xe6   :  { %v113_v6 = vadd.f32 %v147_v4, %v112_v5 }
  0xe7   :  { %v161_v7 = vpop.f32.mrf.mxu0 }
  0xe8   :  { %v119_v8 = vmul.f32 0.5, %v113_v6 }
  0xe9   :  { %v115_v9 = vpop.f32.mrf.mxu0 }
  0xea   :  { %175 = vtanh.f32 %v119_v8  ;;  %v116_v10 = vadd.f32 %v147_v4, %v115_v9 }
  0xeb   :  { %v162_v11 = vpop.f32.mrf.mxu0 }
  0xec   :  { %v120_v12 = vmul.f32 0.5, %v116_v10 }
  0xee   :  { %177 = vtanh.f32 %v120_v12 }
  0xf7   :  { %v176_v13 = vpop.eup %175 }
  0xf8   :  { %v123_v14 = vmul.f32 0.5, %v176_v13 }
  0xfa   :  { %v125_v15 = vadd.f32 0.5, %v123_v14 }
  0xfb   :  { %v178_v16 = vpop.eup %177 }
  0xfc   :  { %127 = vst.msk [vmem:[#allocation7] sm:$0xff] %vm74_vm1, %v125_v15  ;;  %v124_v17 = vmul.f32 0.5, %v178_v16 }
  0xfe   :  { %v126_v18 = vadd.f32 0.5, %v124_v17 }
 0x100   :  { %128 = vst.msk [vmem:[#allocation7 + $0x8] sm:$0xff] %vm74_vm1, %v126_v18 }
 0x101   :  { %230 = shalt.err (!%p227_p0)
}
 0x102   :  { %s252_s26 = smov 128   ;;  %s253_s27 = smov 8  }
 0x103   :  { %140 = dma.vmem_to_hbm [thread:$0]  %s135_s25, 256, %s292_s3, [#allocation4], %s252_s26, %s252_s26, %s253_s27  }
 0x104   :  { %243 = dma.done.wait [#allocation4], 256  }
 0x105   :  { %244 = vsyncadd [#allocation4], 4294967040 }
 0x106   :  { %144 = vsyncpa [#allocation3], 1 }
 0x107   :  { %145 = vsyncpa [#allocation6], 1 }
 0x108   :  { %146 = vsyncpa [#allocation4], 1 }

</bundles_post_ra>
